<compile_context>
chip_gen: v7x
topology: tpu7x:2x2x1
jax: 0.10.0
libtpu: 0.0.40
codegen_flags: <defaults>
</compile_context>

<pallas_src>
import jax
import jax.numpy as jnp
from jax.experimental import pallas as pl
from jax.experimental.pallas import tpu as pltpu


def _hbm_copy_kernel(params_hbm, out_hbm, sem):
    # forward(): return self.params  ->  one HBM->HBM DMA, no VMEM staging.
    copy = pltpu.make_async_copy(params_hbm, out_hbm, sem)
    copy.start()
    copy.wait()


def constant_model_forward(params: jax.Array) -> jax.Array:
    """Pallas equivalent of ConstantModel.forward(): returns params.

    PyTorch's forward() returns a live view of self.params; without buffer
    donation the cheapest faithful JAX equivalent is a fresh array with
    identical contents, produced by a single HBM->HBM DMA in the kernel's
    native layout (no grid, no VMEM round trip, no relayout reshapes).
    """
    nbytes = params.size * jnp.dtype(params.dtype).itemsize
    cost = pl.CostEstimate(
        flops=0,
        transcendentals=0,
        bytes_accessed=2 * nbytes,  # read params + write output, both in HBM
    )
    return pl.pallas_call(
        _hbm_copy_kernel,
        out_shape=jax.ShapeDtypeStruct(params.shape, params.dtype),
        in_specs=[pl.BlockSpec(memory_space=pl.ANY)],   # params stays in HBM
        out_specs=pl.BlockSpec(memory_space=pl.ANY),    # output written in HBM
        scratch_shapes=[pltpu.SemaphoreType.DMA(())],   # DMA completion sem
        cost_estimate=cost,
    )(params)


def init_constant_model_params(key: jax.Array, n_sample_per_frame: int) -> jax.Array:
    """Re-implementation of ConstantModel.__init__ parameter init (JAX PRNG,
    so values will not bit-match a torch-initialized module)."""
    c = 3 * n_sample_per_frame
    k1, k2 = jax.random.split(key)
    top = jax.random.uniform(k1, (2, c), dtype=jnp.float32) / 30.0
    mid = jnp.ones((1, c), dtype=jnp.float32) - 0.01
    bot = (jax.random.uniform(k2, (2, c), dtype=jnp.float32) + 1.0) / 2.0
    return jnp.concatenate((top, mid, bot), axis=0)  # (5, 3*n_sample_per_frame)


if __name__ == "__main__":
    n_sample_per_frame = 64  # small synthetic size -> params shape (5, 192)
    key = jax.random.PRNGKey(0)
    params = init_constant_model_params(key, n_sample_per_frame)

    out = constant_model_forward(params)
    out = jax.block_until_ready(out)

    assert out.shape == (5, 3 * n_sample_per_frame), out.shape
    assert out.dtype == jnp.float32
    assert bool(jnp.allclose(out, params)), "kernel output mismatch with params"

    print("KERNEL_OK")
</pallas_src>

<mosaic_0001>
module attributes {stable_mosaic.version = 11 : i64} {
  func.func @_hbm_copy_kernel(%arg0: memref<5x192xf32, #tpu.memory_space<any>>, %arg1: memref<5x192xf32, #tpu.memory_space<any>>, %arg2: memref<!tpu.dma_semaphore, #tpu.memory_space<semaphore_mem>>) attributes {dimension_semantics = [], scalar_prefetch = 0 : i64, scratch_operands = 1 : i64, tpu.core_type = #tpu.core_type<tc>} {
    tpu.enqueue_dma source(%arg0 : memref<5x192xf32, #tpu.memory_space<any>>) target(%arg1 : memref<5x192xf32, #tpu.memory_space<any>>) target_semaphore(%arg2 : memref<!tpu.dma_semaphore, #tpu.memory_space<semaphore_mem>>)
    tpu.wait_dma2 semaphore(%arg2 : memref<!tpu.dma_semaphore, #tpu.memory_space<semaphore_mem>>) src(%arg0 : memref<5x192xf32, #tpu.memory_space<any>>) dst(%arg1 : memref<5x192xf32, #tpu.memory_space<any>>)
    return
  }
}

</mosaic_0001>

<bundles_post_ra>
// kernel: tpu_custom_call.1
= control target key start
LH: loop header
LB: loop body
LE: loop exit
PB: predicated region body
PF: predicated region fallthrough
CT: control target
= control target key end

     0   :  { %s35_s6 = smov [#allocation2]   ;;  %s36_s7 = smov [#allocation3]   ;;  %s54_s0 = inlined_call_operand.hbm [shape: f32[5,192], index: 0, kind: input, shape index: {}]   ;;  %s55_s1 = inlined_call_operand.hbm [shape: f32[5,192], index: 1, kind: output, shape index: {}]  }
   0x1   :  { %s37_s8 = smov 0  }
   0x2   :  { %18 = dma.general %s54_s0, 256, %s55_s1, %s35_s6, %s36_s7, [#allocation4], %s37_s8, 0  }
   0x3   :  { %33 = dma.done.wait [#allocation2], 256 }
   0x4   :  { %34 = vsyncadd [#allocation2], 4294967040 }
   0x5   :  { %23 = vsyncmov [#allocation2] }
   0x8   :  { %s24_s13 = vpop.sfrf %23 }
   0x9   :  { %p29_p0 = scmp.ne.s32.totalorder %s24_s13, 0 }
   0xb   :  { %28 = shalt.err (%p29_p0)  }

</bundles_post_ra>
